<compile_context>
chip_gen: v6e
topology: v6e:2x2x1
jax: 0.10.0
libtpu: 0.0.40
codegen_flags: <defaults>
</compile_context>

<pallas_src>
import math

import jax
import jax.numpy as jnp
from jax.experimental import pallas as pl
from jax.experimental.pallas import tpu as pltpu


def _round_up(n, m):
    return ((n + m - 1) // m) * m


def _cdiv(a, b):
    return -(-a // b)


# ----------------------------------------------------------------------------
# Pallas kernel: whole 3-layer MLP for one batch tile.
# Refs:
#   xa  (tb, Cin_pad) f32  streamed activation tile (x||a, zero-padded cols)
#   w1  (Cin_pad, H)  f32  resident
#   b1  (1, H)        f32  resident
#   w2  (H, H)        f32  resident
#   b2  (1, H)        f32  resident
#   w3  (1, H)        f32  resident (fc_out weight stored as a row)
#   b3  (1, 1)        f32  SMEM scalar
#   out (1, tb)       f32  lane-dense q row for this batch tile
# ----------------------------------------------------------------------------
def qvalue_kernel(xa_ref, w1_ref, b1_ref, w2_ref, b2_ref, w3_ref, b3_ref,
                  o_ref):
    # Layer 1 -- the torch.cat is already fused into xa / W1.
    h1 = jnp.dot(xa_ref[...], w1_ref[...],
                 preferred_element_type=jnp.float32) + b1_ref[...]
    h1 = jnp.maximum(h1, 0.0)                                    # (tb, H) f32

    # Layer 2.
    h2 = jnp.dot(h1, w2_ref[...],
                 preferred_element_type=jnp.float32) + b2_ref[...]
    h2 = jnp.maximum(h2, 0.0)                                    # (tb, H) f32

    # Layer 3 (out_features == 1): VPU multiply + XLU lane reduction instead
    # of a degenerate Hx1 MXU matmul; written lane-dense as one (1, tb) row.
    q = jnp.sum(h2 * w3_ref[...], axis=-1) + b3_ref[0, 0]        # (tb,)
    o_ref[...] = q.reshape(1, -1)                                # (1, tb)


def qvalue_forward(x, a, params, *, block_b=2048):
    """x: (B, state_dim) f32, a: (B, action_dim) f32 -> q: (B, 1) f32."""
    w1, b1, w2, b2, w3, b3 = params
    B = x.shape[0]
    cin_pad, H = w1.shape

    # Fuse torch.cat into a single zero-padded (B, cin_pad) activation stream.
    xa = jnp.concatenate([x, a], axis=1)
    if xa.shape[1] != cin_pad:
        xa = jnp.pad(xa, ((0, 0), (0, cin_pad - xa.shape[1])))

    # Padding-aware tiling: pick step count first, then the tile size.
    #   * one step when the batch fits (B <= block_b): no per-step overhead,
    #   * even step count otherwise so v7x's two TensorCores both get tiles,
    #   * tb rounded to 128 when multi-step so the lane-dense output block
    #     satisfies the (.,128) rule; to 8 sublanes when single-step.
    n_steps = max(1, _cdiv(B, block_b))
    if n_steps > 1 and n_steps % 2 == 1:
        n_steps += 1
    tb = _round_up(_cdiv(B, n_steps), 128 if n_steps > 1 else 8)
    b_pad = n_steps * tb
    if b_pad != B:
        xa = jnp.pad(xa, ((0, b_pad - B), (0, 0)))

    def resident(arr):
        # Constant index_map -> block never changes -> stays VMEM-resident
        # across grid steps (no re-DMA).
        return pl.BlockSpec(arr.shape, lambda i: (0,) * arr.ndim)

    cost = pl.CostEstimate(
        flops=2 * b_pad * H * (cin_pad + H + 1),
        transcendentals=0,
        bytes_accessed=(b_pad * cin_pad + b_pad) * 4
        + (cin_pad * H + H * H + 3 * H + 1) * 4,
    )

    q_rows = pl.pallas_call(
        qvalue_kernel,
        out_shape=jax.ShapeDtypeStruct((1, b_pad), jnp.float32),
        grid=(n_steps,),
        in_specs=[
            pl.BlockSpec((tb, cin_pad), lambda i: (i, 0)),       # streamed x||a
            resident(w1), resident(b1),
            resident(w2), resident(b2),
            resident(w3),
            pl.BlockSpec(memory_space=pltpu.MemorySpace.SMEM),   # b3 scalar
        ],
        out_specs=pl.BlockSpec((1, tb), lambda i: (0, i)),       # lane-dense
        compiler_params=pltpu.CompilerParams(
            dimension_semantics=("parallel",)),                  # v7x: 2 TCs
        cost_estimate=cost,
    )(xa, w1, b1, w2, b2, w3, b3)

    # Padded rows produce garbage q (bias terms); slice them off here.
    return q_rows[0, :B].reshape(B, 1)


# ----------------------------------------------------------------------------
# Deterministic parameter init mimicking torch.nn.Linear defaults
# (uniform +/- 1/sqrt(fan_in)); weights stored pre-transposed as (in, out).
# W1's input dim is zero-padded to a sublane multiple so the fused x||a
# stream is (B, cin_pad); everything stays f32 (matches torch numerics).
# ----------------------------------------------------------------------------
def init_params(key, state_dim, hidden_dim, action_dim):
    cin = state_dim + action_dim
    cin_pad = _round_up(cin, 8)
    keys = jax.random.split(key, 6)

    def linear(kw, kb, fan_in, fan_out):
        bound = 1.0 / math.sqrt(fan_in)
        w = jax.random.uniform(kw, (fan_in, fan_out), jnp.float32, -bound, bound)
        b = jax.random.uniform(kb, (1, fan_out), jnp.float32, -bound, bound)
        return w, b

    w1, b1 = linear(keys[0], keys[1], cin, hidden_dim)
    w2, b2 = linear(keys[2], keys[3], hidden_dim, hidden_dim)
    w3, b3 = linear(keys[4], keys[5], hidden_dim, 1)

    w1 = jnp.pad(w1, ((0, cin_pad - cin), (0, 0)))   # zero rows for padded cols
    w3 = w3.T                                        # (1, H): VPU/lane-reduce path
    return (w1, b1, w2, b2, w3, b3)                  # b3: (1, 1)


def reference_forward(x, a, params):
    """Plain-JAX f32 reference with the same math as the PyTorch module."""
    w1, b1, w2, b2, w3, b3 = params
    cin = x.shape[1] + a.shape[1]
    hp = jax.lax.Precision.HIGHEST
    xa = jnp.concatenate([x, a], axis=1)
    h1 = jnp.maximum(jnp.dot(xa, w1[:cin], precision=hp) + b1, 0.0)
    h2 = jnp.maximum(jnp.dot(h1, w2, precision=hp) + b2, 0.0)
    return jnp.dot(h2, w3.T, precision=hp) + b3


if __name__ == "__main__":
    # Small shapes consistent with the module: continuous-action Q-net with a
    # CartPole-sized observation (state_dim=4), a 2-D action vector, H=128.
    batch = 2
    state_dim = 4
    action_dim = 2
    hidden_dim = 128

    key = jax.random.PRNGKey(0)
    kx, ka, kp = jax.random.split(key, 3)

    x = jax.random.normal(kx, (batch, state_dim), jnp.float32)
    a = jax.random.normal(ka, (batch, action_dim), jnp.float32)
    params = init_params(kp, state_dim, hidden_dim, action_dim)

    q = jax.block_until_ready(qvalue_forward(x, a, params))
    q_ref = reference_forward(x, a, params)
    assert q.shape == (batch, 1)
    # Kernel MXU f32 matmuls may use hardware bf16 passes; allow small slack
    # against the HIGHEST-precision reference.
    assert jnp.allclose(q, q_ref, atol=2e-2, rtol=2e-2), (q, q_ref)

    # Also exercise the multi-tile (grid > 1, padded-batch) path.
    batch2 = 300
    x2 = jax.random.normal(jax.random.PRNGKey(1), (batch2, state_dim), jnp.float32)
    a2 = jax.random.normal(jax.random.PRNGKey(2), (batch2, action_dim), jnp.float32)
    q2 = jax.block_until_ready(qvalue_forward(x2, a2, params, block_b=128))
    q2_ref = reference_forward(x2, a2, params)
    assert q2.shape == (batch2, 1)
    assert jnp.allclose(q2, q2_ref, atol=2e-2, rtol=2e-2)

    print("KERNEL_OK")
</pallas_src>

<mosaic_0001>
module attributes {stable_mosaic.version = 11 : i64} {
  func.func @qvalue_kernel(%arg0: i32, %arg1: memref<8x8xf32, #tpu.memory_space<vmem>>, %arg2: memref<8x128xf32, #tpu.memory_space<vmem>>, %arg3: memref<1x128xf32, #tpu.memory_space<vmem>>, %arg4: memref<128x128xf32, #tpu.memory_space<vmem>>, %arg5: memref<1x128xf32, #tpu.memory_space<vmem>>, %arg6: memref<1x128xf32, #tpu.memory_space<vmem>>, %arg7: memref<1x1xf32, #tpu.memory_space<smem>>, %arg8: memref<1x8xf32, #tpu.memory_space<vmem>>) attributes {dimension_semantics = [#tpu.dimension_semantics<parallel>], iteration_bounds = array<i64: 1>, scalar_prefetch = 0 : i64, scratch_operands = 0 : i64, tpu.core_type = #tpu.core_type<tc>, window_params = [{transform_indices = @transform_0, window_bounds = array<i64: 8, 8>}, {pipeline_mode = #tpu.pipeline_mode<synchronous>, transform_indices = @transform_1, window_bounds = array<i64: 8, 128>}, {pipeline_mode = #tpu.pipeline_mode<synchronous>, transform_indices = @transform_2, window_bounds = array<i64: 1, 128>}, {pipeline_mode = #tpu.pipeline_mode<synchronous>, transform_indices = @transform_3, window_bounds = array<i64: 128, 128>}, {pipeline_mode = #tpu.pipeline_mode<synchronous>, transform_indices = @transform_4, window_bounds = array<i64: 1, 128>}, {pipeline_mode = #tpu.pipeline_mode<synchronous>, transform_indices = @transform_5, window_bounds = array<i64: 1, 128>}, {transform_indices = @transform_6, window_bounds = array<i64: 1, 1>}, {transform_indices = @transform_7, window_bounds = array<i64: 1, 8>}]} {
    %c0 = arith.constant 0 : index
    %c0_0 = arith.constant 0 : index
    %0 = vector.load %arg1[%c0, %c0_0] : memref<8x8xf32, #tpu.memory_space<vmem>>, vector<8x8xf32>
    %c0_1 = arith.constant 0 : index
    %c0_2 = arith.constant 0 : index
    %1 = vector.load %arg2[%c0_1, %c0_2] : memref<8x128xf32, #tpu.memory_space<vmem>>, vector<8x128xf32>
    %cst = arith.constant dense<0.000000e+00> : vector<8x128xf32>
    %2 = tpu.matmul %0, %1, %cst {dimension_numbers = #tpu.dot_dimension_numbers<[1], [0], [0], [1], [0, 0, 1, 1], [], []>} : vector<8x8xf32>, vector<8x128xf32>, vector<8x128xf32> -> vector<8x128xf32>
    %c0_3 = arith.constant 0 : index
    %c0_4 = arith.constant 0 : index
    %3 = vector.load %arg3[%c0_3, %c0_4] : memref<1x128xf32, #tpu.memory_space<vmem>>, vector<1x128xf32>
    %4 = vector.broadcast %3 : vector<1x128xf32> to vector<8x128xf32>
    %5 = arith.addf %2, %4 : vector<8x128xf32>
    %cst_5 = arith.constant 0.000000e+00 : f32
    %6 = vector.broadcast %cst_5 : f32 to vector<8x128xf32>
    %7 = arith.maximumf %5, %6 : vector<8x128xf32>
    %c0_6 = arith.constant 0 : index
    %c0_7 = arith.constant 0 : index
    %8 = vector.load %arg4[%c0_6, %c0_7] : memref<128x128xf32, #tpu.memory_space<vmem>>, vector<128x128xf32>
    %cst_8 = arith.constant dense<0.000000e+00> : vector<8x128xf32>
    %9 = tpu.matmul %7, %8, %cst_8 {dimension_numbers = #tpu.dot_dimension_numbers<[1], [0], [0], [1], [0, 0, 1, 1], [], []>} : vector<8x128xf32>, vector<128x128xf32>, vector<8x128xf32> -> vector<8x128xf32>
    %c0_9 = arith.constant 0 : index
    %c0_10 = arith.constant 0 : index
    %10 = vector.load %arg5[%c0_9, %c0_10] : memref<1x128xf32, #tpu.memory_space<vmem>>, vector<1x128xf32>
    %11 = vector.broadcast %10 : vector<1x128xf32> to vector<8x128xf32>
    %12 = arith.addf %9, %11 : vector<8x128xf32>
    %cst_11 = arith.constant 0.000000e+00 : f32
    %13 = vector.broadcast %cst_11 : f32 to vector<8x128xf32>
    %14 = arith.maximumf %12, %13 : vector<8x128xf32>
    %c0_12 = arith.constant 0 : index
    %c0_13 = arith.constant 0 : index
    %15 = vector.load %arg6[%c0_12, %c0_13] : memref<1x128xf32, #tpu.memory_space<vmem>>, vector<1x128xf32>
    %16 = vector.broadcast %15 : vector<1x128xf32> to vector<8x128xf32>
    %17 = arith.mulf %14, %16 : vector<8x128xf32>
    %cst_14 = arith.constant dense<0.000000e+00> : vector<8xf32>
    %18 = vector.multi_reduction <add>, %17, %cst_14 [1] : vector<8x128xf32> to vector<8xf32>
    %c0_15 = arith.constant 0 : index
    %c0_16 = arith.constant 0 : index
    %19 = memref.load %arg7[%c0_15, %c0_16] : memref<1x1xf32, #tpu.memory_space<smem>>
    %20 = vector.broadcast %19 : f32 to vector<8xf32>
    %21 = arith.addf %18, %20 : vector<8xf32>
    %22 = vector.shape_cast %21 : vector<8xf32> to vector<1x8xf32>
    %c0_17 = arith.constant 0 : index
    %c0_18 = arith.constant 0 : index
    %23 = vector.load %arg8[%c0_17, %c0_18] : memref<1x8xf32, #tpu.memory_space<vmem>>, vector<1x8xf32>
    tpu.vector_store %arg8[%c0_17, %c0_18], %22 {strides = array<i32>} : memref<1x8xf32, #tpu.memory_space<vmem>>, vector<1x8xf32>,
    return
  }
  func.func @transform_0(%arg0: i32) -> (i32, i32) {
    %c0_i32 = arith.constant 0 : i32
    %c0_i32_0 = arith.constant 0 : i32
    return %arg0, %c0_i32 : i32, i32
  }
  func.func @transform_1(%arg0: i32) -> (i32, i32) {
    %c0_i32 = arith.constant 0 : i32
    %c0_i32_0 = arith.constant 0 : i32
    %c0_i32_1 = arith.constant 0 : i32
    return %c0_i32, %c0_i32_0 : i32, i32
  }
  func.func @transform_2(%arg0: i32) -> (i32, i32) {
    %c0_i32 = arith.constant 0 : i32
    %c0_i32_0 = arith.constant 0 : i32
    %c0_i32_1 = arith.constant 0 : i32
    return %c0_i32, %c0_i32_0 : i32, i32
  }
  func.func @transform_3(%arg0: i32) -> (i32, i32) {
    %c0_i32 = arith.constant 0 : i32
    %c0_i32_0 = arith.constant 0 : i32
    %c0_i32_1 = arith.constant 0 : i32
    return %c0_i32, %c0_i32_0 : i32, i32
  }
  func.func @transform_4(%arg0: i32) -> (i32, i32) {
    %c0_i32 = arith.constant 0 : i32
    %c0_i32_0 = arith.constant 0 : i32
    %c0_i32_1 = arith.constant 0 : i32
    return %c0_i32, %c0_i32_0 : i32, i32
  }
  func.func @transform_5(%arg0: i32) -> (i32, i32) {
    %c0_i32 = arith.constant 0 : i32
    %c0_i32_0 = arith.constant 0 : i32
    %c0_i32_1 = arith.constant 0 : i32
    return %c0_i32, %c0_i32_0 : i32, i32
  }
  func.func @transform_6(%arg0: i32) -> (i32, i32) {
    %c0_i32 = arith.constant 0 : i32
    %c0_i32_0 = arith.constant 0 : i32
    %c0_i32_1 = arith.constant 0 : i32
    return %c0_i32, %c0_i32_0 : i32, i32
  }
  func.func @transform_7(%arg0: i32) -> (i32, i32) {
    %c0_i32 = arith.constant 0 : i32
    %c0_i32_0 = arith.constant 0 : i32
    return %c0_i32, %arg0 : i32, i32
  }
}

</mosaic_0001>

<bundles_post_ra>
// kernel: tpu_custom_call.1
= control target key start
LH: loop header
LB: loop body
LE: loop exit
PB: predicated region body
PF: predicated region fallthrough
CT: control target
= control target key end

     0   :  { %13 = vsyncpa [#allocation4], 0  ;;  %s511_s0 = inlined_call_operand.hbm [shape: f32[8,8], index: 0, kind: input, shape index: {}]   ;;  %s512_s1 = inlined_call_operand.hbm [shape: f32[8,128], index: 1, kind: input, shape index: {}]   ;;  %s513_s2 = inlined_call_operand.vmem [shape: f32[1,128], index: 2, kind: input, shape index: {}]   ;;  %s514_s3 = inlined_call_operand.hbm [shape: f32[128,128], index: 3, kind: input, shape index: {}]   ;;  %s515_s4 = inlined_call_operand.vmem [shape: f32[1,128], index: 4, kind: input, shape index: {}]   ;;  %s516_s5 = inlined_call_operand.vmem [shape: f32[1,128], index: 5, kind: input, shape index: {}]   ;;  %s517_s6 = inlined_call_operand.<no memory space> [shape: f32[1,1], index: 6, kind: input, shape index: {}]   ;;  %s518_s7 = inlined_call_operand.hbm [shape: f32[1,8], index: 7, kind: output, shape index: {}]  }
   0x1   :  { %14 = vsyncpa [#allocation7], 0 }
   0x2   :  { %15 = vsyncpa [#allocation5], 0  ;;  %s439_s24 = smov [#allocation6]   ;;  %s440_s26 = smov [#allocation3]  }
   0x3   :  { %s32_s25 = sshll.u32 %s439_s24, 4  ;;  %s22_s27 = sshll.u32 %s440_s26, 4  ;;  %s33_s25 = int_to_ptr.vmem [resolvable:$true] %s32_s25  ;;  %s23_s27 = int_to_ptr.vmem [resolvable:$true] %s22_s27 }
   0x4   :  { %s361_s28 = scalar_lea.vmem %s33_s25, 128  ;;  %p366_p1 = scmp.lt.s32.totalorder %s33_s25, %s33_s25 }
   0x5   :  { %p362_p0 = scmp.ne.s32.totalorder %s33_s25, %s361_s28  ;;  %p367_p2 = scmp.lt.s32.totalorder %s361_s28, %s361_s28 }
   0x7   :  { %p368_p3 = por %p367_p2, %p366_p1 }
   0x9   :  { %p369_p4 = pnand %p368_p3, %p362_p0 }
   0xb   :  { %372 = shalt.err (!%p369_p4)
}
   0xc   :  { %35 = dma.hbm_to_vmem [thread:$0]  %s512_s1, 128, %s33_s25, [#allocation7]  }
   0xd   :  { %s381_s8 = scalar_lea.vmem %s23_s27, 128  ;;  %p386_p6 = scmp.lt.s32.totalorder %s23_s27, %s23_s27 }
   0xe   :  { %p382_p5 = scmp.ne.s32.totalorder %s23_s27, %s381_s8  ;;  %p387_p7 = scmp.lt.s32.totalorder %s381_s8, %s381_s8 }
  0x10   :  { %p388_p8 = por %p387_p7, %p386_p6 }
  0x12   :  { %p389_p9 = pnand %p388_p8, %p382_p5 }
  0x14   :  { %392 = shalt.err (!%p389_p9)
}
  0x15   :  { %25 = dma.hbm_to_vmem [thread:$0]  %s511_s0, 128, %s23_s27, [#allocation4]  }
  0x16   :  { %s441_s11 = smov [#allocation8]  }
  0x17   :  { %s43_s12 = sshll.u32 %s441_s11, 4  ;;  %s44_s12 = int_to_ptr.vmem [resolvable:$true] %s43_s12 }
  0x18   :  { %s401_s13 = scalar_lea.vmem %s44_s12, 2048  ;;  %p406_p11 = scmp.lt.s32.totalorder %s44_s12, %s44_s12 }
  0x19   :  { %p402_p10 = scmp.ne.s32.totalorder %s44_s12, %s401_s13  ;;  %p407_p12 = scmp.lt.s32.totalorder %s401_s13, %s401_s13 }
  0x1b   :  { %p408_p13 = por %p407_p12, %p406_p11 }
  0x1d   :  { %p409_p0 = pnand %p408_p13, %p402_p10 }
  0x1f   :  { %412 = shalt.err (!%p409_p0)
}
  0x20   :  { %s442_s1 = smov 128   ;;  %s443_s14 = smov 8  }
  0x21   :  { %49 = dma.hbm_to_vmem [thread:$0]  %s514_s3, 2048, %s44_s12, [#allocation7], %s442_s1, %s442_s1, %s443_s14  }
  0x22   :  { %433 = dma.done.wait [#allocation4], 128  }
  0x23   :  { %434 = vsyncadd [#allocation4], 4294967168 }
  0x24   :  { %435 = dma.done.wait [#allocation7], 2176  }
  0x25   :  { %436 = vsyncadd [#allocation7], 4294965120  ;;  %v444_v0 = vmov 0.0   ;;  %vm445_vm0 = vmmov 0   ;;  %vm74_vm1 = vcmask 64512   ;;  %v66_v1 = vld [vmem:[#allocation6] sm:$0xff]  ;;  %v257_v31 = vlaneseq }
  0x26   :  { %305 = vmatprep.subr.mxu0 %v444_v0  ;;  %307 = vmatprep.mubr.msk.f32.mxu0 %vm445_vm0, %v444_v0  ;;  %v65_v2 = vld [vmem:[#allocation3] sm:$0xff]  ;;  %v164_v3 = vld [vmem:[#allocation8 + $0x78] sm:$0xff]  ;;  %v162_v5 = vld [vmem:[#allocation8 + $0x68] sm:$0xff]  ;;  %v254_v34 = vstv %s517_s6  ;;  %vm264_vm2 = vcmask 57344  }
  0x27   :  { %310 = vmatprep.subr.mxu1 %v444_v0  ;;  %342 = vmatprep.mubr.msk.f32.mxu1 %vm445_vm0, %v444_v0  ;;  %v163_v4 = vld [vmem:[#allocation8 + $0x70] sm:$0xff]  ;;  %v161_v6 = vld [vmem:[#allocation8 + $0x60] sm:$0xff]  ;;  %v160_v7 = vld [vmem:[#allocation8 + $0x58] sm:$0xff]  ;;  %v258_v32 = vand.u32 127, %v257_v31  ;;  %v260_v33 = vshrl.u32 %v257_v31, 7 }
  0x28   :  { %306 = vmatpush3.msra.mxu0 %v66_v1  ;;  %311 = vmatpush3.msra.mxu1 %v164_v3  ;;  %v159_v8 = vld [vmem:[#allocation8 + $0x50] sm:$0xff]  ;;  %v158_v9 = vld [vmem:[#allocation8 + $0x48] sm:$0xff]  ;;  %v157_v10 = vld [vmem:[#allocation8 + $0x40] sm:$0xff] }
  0x29   :  { %308 = vmatmul.mubr.msk.f32.vlgmr.msra.gmra.mxu0 %vm74_vm1, %v65_v2  ;;  %312 = vmatprep.subr.mxu1 %v444_v0  ;;  %v156_v11 = vld [vmem:[#allocation8 + $0x38] sm:$0xff]  ;;  %v155_v12 = vld [vmem:[#allocation8 + $0x30] sm:$0xff]  ;;  %v154_v13 = vld [vmem:[#allocation8 + $0x28] sm:$0xff]  ;;  %v261_v35 = vsub.s32 %v258_v32, %v260_v33 }
  0x2a   :  { %313 = vmatpush3.msra.mxu1 %v163_v4  ;;  %v153_v14 = vld [vmem:[#allocation8 + $0x20] sm:$0xff]  ;;  %v152_v15 = vld [vmem:[#allocation8 + $0x18] sm:$0xff]  ;;  %v151_v16 = vld [vmem:[#allocation8 + $0x10] sm:$0xff] }
  0x2b   :  { %314 = vmatprep.subr.mxu1 %v444_v0  ;;  %v150_v17 = vld [vmem:[#allocation8 + $0x8] sm:$0xff]  ;;  %v149_v18 = vld [vmem:[#allocation8] sm:$0xff]  ;;  %v282_v19 = vld [vmem:[%s513_s2] ss:$0 sm:$0xff] }
  0x2c   :  { %315 = vmatpush3.msra.mxu1 %v162_v5  ;;  %v284_v24 = vld [vmem:[%s515_s4] ss:$0 sm:$0xff]  ;;  %s446_s4 = smov [#allocation9]  }
  0x2d   :  { %316 = vmatprep.subr.mxu1 %v444_v0  ;;  %v285_v28 = vld [vmem:[%s516_s5] ss:$0 sm:$0xff]  ;;  %s272_s22 = sshll.u32 %s446_s4, 4  ;;  %s273_s22 = int_to_ptr.vmem [resolvable:$true] %s272_s22 }
  0x2e   :  { %317 = vmatpush3.msra.mxu1 %v161_v6  ;;  %s413_s5 = scalar_lea.vmem %s273_s22, 16  ;;  %s417_s23 = scalar_lea.vmem %s273_s22, 32 }
  0x2f   :  { %318 = vmatprep.subr.mxu1 %v444_v0  ;;  %p414_p1 = scmp.ne.s32.totalorder %s273_s22, %s413_s5  ;;  %p418_p2 = scmp.lt.s32.totalorder %s273_s22, %s273_s22 }
  0x30   :  { %319 = vmatpush3.msra.mxu1 %v160_v7  ;;  %p419_p3 = scmp.lt.s32.totalorder %s417_s23, %s413_s5 }
  0x31   :  { %320 = vmatprep.subr.mxu1 %v444_v0 }
  0x32   :  { %321 = vmatpush3.msra.mxu1 %v159_v8  ;;  %p420_p4 = por %p419_p3, %p418_p2 }
  0x33   :  { %322 = vmatprep.subr.mxu1 %v444_v0 }
  0x34   :  { %323 = vmatpush3.msra.mxu1 %v158_v9  ;;  %p421_p5 = pnand %p420_p4, %p414_p1 }
  0x35   :  { %324 = vmatprep.subr.mxu1 %v444_v0 }
  0x36   :  { %325 = vmatpush3.msra.mxu1 %v157_v10 }
  0x37   :  { %326 = vmatprep.subr.mxu1 %v444_v0 }
  0x38   :  { %327 = vmatpush3.msra.mxu1 %v156_v11 }
  0x39   :  { %328 = vmatprep.subr.mxu1 %v444_v0 }
  0x3a   :  { %329 = vmatpush3.msra.mxu1 %v155_v12 }
  0x3b   :  { %330 = vmatprep.subr.mxu1 %v444_v0 }
  0x3c   :  { %331 = vmatpush3.msra.mxu1 %v154_v13 }
  0x3d   :  { %332 = vmatprep.subr.mxu1 %v444_v0 }
  0x3e   :  { %333 = vmatpush3.msra.mxu1 %v153_v14 }
  0x3f   :  { %334 = vmatprep.subr.mxu1 %v444_v0 }
  0x40   :  { %335 = vmatpush3.msra.mxu1 %v152_v15 }
  0x41   :  { %336 = vmatprep.subr.mxu1 %v444_v0 }
  0x42   :  { %337 = vmatpush3.msra.mxu1 %v151_v16 }
  0x43   :  { %338 = vmatprep.subr.mxu1 %v444_v0 }
  0x44   :  { %339 = vmatpush3.msra.mxu1 %v150_v17 }
  0x45   :  { %340 = vmatprep.subr.mxu1 %v444_v0 }
  0x46   :  { %341 = vmatpush3.msra.mxu1 %v149_v18 }
  0xe9   :  { %v144_v20 = vpop.f32.mrf.mxu0 }
  0xea   :  { %v145_v21 = vadd.f32 %v282_v19, %v144_v20 }
  0xeb   :  { %v309_v22 = vpop.f32.mrf.mxu0 }
  0xec   :  { %v148_v23 = vmax.f32 %v145_v21, 0.0 }
  0xee   :  { %343 = vmatmul.mubr.f32.vlgmr.msra.gmra.mxu1 %v148_v23 }
 0x1ae   :  { %v238_v25 = vpop.f32.mrf.mxu1 }
 0x1af   :  { %v239_v26 = vadd.f32 %v284_v24, %v238_v25 }
 0x1b0   :  { %v344_v27 = vpop.f32.mrf.mxu1 }
 0x1b1   :  { %v242_v29 = vmax.f32 %v239_v26, 0.0 }
 0x1b3   :  { %v250_v30 = vmul.f32 %v285_v28, %v242_v29 }
 0x1b5   :  { %251 = vadd.xlane.f32.xlu0 %v250_v30 }
 0x23e   :  { %v252_v36 = vpop.xlane.xlu0 %251 }
 0x23f   :  { %v255_v37 = vadd.f32 %v254_v34, %v252_v36 }
 0x241   :  { %v262_v38 = vrot.slane %v255_v37, %v261_v35 }
 0x243   :  { %265 = vst.msk [vmem:[#allocation9] sm:$0x1] %vm264_vm2, %v262_v38 }
 0x244   :  { %424 = shalt.err (!%p421_p5)
}
 0x245   :  { %275 = dma.vmem_to_hbm [thread:$0]  %s273_s22, 16, %s518_s7, [#allocation5]  }
 0x246   :  { %437 = dma.done.wait [#allocation5], 16  }
 0x247   :  { %438 = vsyncadd [#allocation5], 4294967280 }
 0x248   :  { %279 = vsyncpa [#allocation4], 1 }
 0x249   :  { %280 = vsyncpa [#allocation7], 1 }
 0x24a   :  { %281 = vsyncpa [#allocation5], 1 }

</bundles_post_ra>
